<compile_context>
chip_gen: v7x
topology: tpu7x:2x2x1
jax: 0.10.0
libtpu: 0.0.40
codegen_flags: <defaults>
</compile_context>

<pallas_src>
import numpy as np
import jax
import jax.numpy as jnp
from jax import lax
from jax.experimental import pallas as pl
from jax.experimental.pallas import tpu as pltpu


def _round_up(x, m):
    return (x + m - 1) // m * m


def sage_kernel(a_ref, xwl_ref, r_ref, invdeg_ref, o_ref, acc_ref):
    """One (row-tile, k-tile) step of  L2norm(inv_deg * (A @ XWl) + R)."""
    k = pl.program_id(1)

    @pl.when(k == 0)
    def _init():
        acc_ref[...] = jnp.zeros_like(acc_ref)

    # Hot loop: (tm, tk) int8 0/1 adjacency (cast to bf16 in VMEM) times the
    # precomputed (tk, 128) bf16 XWl block on the MXU, f32 accumulation.
    acc_ref[...] += jnp.dot(a_ref[...].astype(jnp.bfloat16), xwl_ref[...],
                            preferred_element_type=jnp.float32)

    @pl.when(k == pl.num_programs(1) - 1)
    def _finalize():
        # Mean aggregation: exact f32 per-row 1/deg scale applied exactly once,
        # then the root/bias term R = X @ Wr^T + b.
        h = acc_ref[...] * invdeg_ref[...] + r_ref[...]
        # F.normalize(h, p=2, dim=-1), eps=1e-12; rsqrt keeps this on the EUP.
        ssq = jnp.sum(h * h, axis=-1, keepdims=True)
        o_ref[...] = h * lax.rsqrt(jnp.maximum(ssq, 1e-24))


def sage_conv_pallas(edge_index, x, w_l_t, w_r_t, b_l, *, tm=2048, tk=2048):
    """SAGEConv forward.

    edge_index: [2, E] int32 (row 0 = src j, row 1 = dst i, message j -> i)
    x:          [N, F] f32 node features
    w_l_t/w_r_t:[F, H] f32 pre-transposed weights (lin_l / lin_r)
    b_l:        [1, H] f32 bias of lin_l
    """
    n, f = x.shape
    h_out = w_l_t.shape[1]

    np_r = _round_up(n, tm)            # padded rows  (output / row tiles)
    np_c = _round_up(n, tk)            # padded cols  (reduction tiles)
    hp = _round_up(h_out, 128)         # lane-dense output width

    src, dst = edge_index[0], edge_index[1]
    f32 = jnp.float32

    # 0/1 (edge-count) adjacency, built directly at padded shape in int8:
    # A[i, j] = #edges j -> i.  No f32 N^2 intermediate is ever materialized.
    a_i8 = jnp.zeros((np_r, np_c), jnp.int8).at[dst, src].add(
        jnp.ones(src.shape, jnp.int8))

    # Per-row in-degree and its reciprocal (exact f32), O(E) to build.
    deg = jnp.zeros((np_r, 1), f32).at[dst, 0].add(1.0)
    inv_deg = 1.0 / jnp.maximum(deg, 1.0)

    # Reassociated right-hand operands (tiny F x H matmuls, done once):
    #   XWl = X @ Wl^T   (bf16, contraction operand of the hot loop)
    #   R   = X @ Wr^T + b   (f32, added in the finalize branch)
    # Zero-padded rows/lanes contribute exactly 0.
    xwl = jnp.zeros((np_c, hp), f32).at[:n, :h_out].set(x @ w_l_t)
    xwl = xwl.astype(jnp.bfloat16)
    r = jnp.zeros((np_r, hp), f32).at[:n, :h_out].set(x @ w_r_t + b_l)

    grid = (np_r // tm, np_c // tk)    # (row tiles, reduction tiles) — k last

    out = pl.pallas_call(
        sage_kernel,
        out_shape=jax.ShapeDtypeStruct((np_r, hp), jnp.float32),
        grid_spec=pltpu.PrefetchScalarGridSpec(
            num_scalar_prefetch=0,
            grid=grid,
            in_specs=[
                pl.BlockSpec((tm, tk), lambda i, k: (i, k)),    # A (int8)
                pl.BlockSpec((tk, hp), lambda i, k: (k, 0)),    # XWl (bf16)
                pl.BlockSpec((tm, hp), lambda i, k: (i, 0)),    # R   (f32)
                pl.BlockSpec((tm, 1), lambda i, k: (i, 0)),     # 1/deg (f32)
            ],
            out_specs=pl.BlockSpec((tm, hp), lambda i, k: (i, 0)),
            scratch_shapes=[pltpu.VMEM((tm, hp), jnp.float32)],  # accumulator
        ),
        compiler_params=pltpu.CompilerParams(
            dimension_semantics=("parallel", "arbitrary"),
            # 2048-tiles: ~14 MiB double-buffered; 48 MiB leaves headroom even
            # on v7x (64 MiB physical VMEM); well within v5e/v6e's 128 MiB.
            vmem_limit_bytes=48 * 1024 * 1024,
        ),
    )(a_i8, xwl, r, inv_deg)

    return out[:n, :h_out]


def reference(edge_index, x, w_l_t, w_r_t, b_l):
    """Pure-JAX SAGEConv(mean, normalize=True) reference."""
    n = x.shape[0]
    src, dst = edge_index[0], edge_index[1]
    a = jnp.zeros((n, n), jnp.float32).at[dst, src].add(1.0)
    deg = jnp.maximum(jnp.sum(a, axis=1, keepdims=True), 1.0)
    agg = (a / deg) @ x
    h = agg @ w_l_t + x @ w_r_t + b_l
    nrm = jnp.sqrt(jnp.sum(h * h, axis=-1, keepdims=True))
    return h / jnp.maximum(nrm, 1e-12)


if __name__ == "__main__":
    key = jax.random.PRNGKey(0)
    k_x, k_e, k_wl, k_wr, k_b = jax.random.split(key, 5)

    N = 200      # graph nodes
    F_IN = 8     # data.num_features (synthetic stand-in for Graph2.xlsx)
    H = 50       # SAGEConv output channels, as in the module

    x = jax.random.normal(k_x, (N, F_IN), dtype=jnp.float32)

    # Deterministic synthetic edge list: directed ring plus random extra edges.
    ring_src = jnp.arange(N, dtype=jnp.int32)
    ring_dst = (ring_src + 1) % N
    extra = jax.random.randint(k_e, (2, 2 * N), 0, N, dtype=jnp.int32)
    edge_index = jnp.concatenate(
        [jnp.stack([ring_src, ring_dst]), extra], axis=1)      # [2, 3N]

    # SAGEConv parameters (lin_l has bias, lin_r does not); pre-transposed.
    scale = 1.0 / np.sqrt(F_IN)
    w_l_t = jax.random.uniform(k_wl, (F_IN, H), jnp.float32, -scale, scale)
    w_r_t = jax.random.uniform(k_wr, (F_IN, H), jnp.float32, -scale, scale)
    b_l = jax.random.uniform(k_b, (1, H), jnp.float32, -scale, scale)

    # Small tiles so the toy graph exercises the real (row, reduction) grid:
    # N=200 pads to 256 -> grid (2, 2).  Defaults (2048) are the at-scale
    # tile sizes (sized for v7x's 64 MiB VMEM).
    # TODO(synk): at real graph scale replace the dense O(N^2) adjacency with
    # a CSR scalar-prefetch gather/segment-sum kernel (streams O(E) bytes).
    out = jax.block_until_ready(
        sage_conv_pallas(edge_index, x, w_l_t, w_r_t, b_l, tm=128, tk=128))

    ref = jax.block_until_ready(reference(edge_index, x, w_l_t, w_r_t, b_l))
    assert out.shape == (N, H)
    # Adjacency and 1/deg are now exact; only XWl is bf16 (f32 MXU acc), so the
    # error budget is ~1e-3.
    assert np.allclose(np.asarray(out), np.asarray(ref), atol=1e-2, rtol=1e-2)

    print("KERNEL_OK")
</pallas_src>

<mosaic_0001>
module attributes {stable_mosaic.version = 11 : i64} {
  func.func @sage_kernel(%arg0: i32, %arg1: i32, %arg2: memref<128x128xi8, #tpu.memory_space<vmem>>, %arg3: memref<128x128xbf16, #tpu.memory_space<vmem>>, %arg4: memref<128x128xf32, #tpu.memory_space<vmem>>, %arg5: memref<128x1xf32, #tpu.memory_space<vmem>>, %arg6: memref<128x128xf32, #tpu.memory_space<vmem>>, %arg7: memref<128x128xf32, #tpu.memory_space<vmem>>) attributes {dimension_semantics = [#tpu.dimension_semantics<parallel>, #tpu.dimension_semantics<arbitrary>], iteration_bounds = array<i64: 2, 2>, scalar_prefetch = 0 : i64, scratch_operands = 1 : i64, tpu.core_type = #tpu.core_type<tc>, window_params = [{transform_indices = @transform_0, window_bounds = array<i64: 128, 128>}, {transform_indices = @transform_1, window_bounds = array<i64: 128, 128>}, {transform_indices = @transform_2, window_bounds = array<i64: 128, 128>}, {transform_indices = @transform_3, window_bounds = array<i64: 128, 1>}, {transform_indices = @transform_4, window_bounds = array<i64: 128, 128>}]} {
    %c0_i32 = arith.constant 0 : i32
    %0 = arith.cmpi eq, %arg1, %c0_i32 : i32
    %1 = arith.extui %0 : i1 to i32
    %c0_i32_0 = arith.constant 0 : i32
    %2 = arith.cmpi ne, %1, %c0_i32_0 : i32
    scf.if %2 {
      %cst_9 = arith.constant 0.000000e+00 : f32
      %13 = vector.broadcast %cst_9 : f32 to vector<128x128xf32>
      %c0_10 = arith.constant 0 : index
      %c0_11 = arith.constant 0 : index
      %14 = vector.load %arg7[%c0_10, %c0_11] : memref<128x128xf32, #tpu.memory_space<vmem>>, vector<128x128xf32>
      tpu.vector_store %arg7[%c0_10, %c0_11], %13 {strides = array<i32>} : memref<128x128xf32, #tpu.memory_space<vmem>>, vector<128x128xf32>,
    } else {
    }
    %c0 = arith.constant 0 : index
    %c0_1 = arith.constant 0 : index
    %3 = vector.load %arg7[%c0, %c0_1] : memref<128x128xf32, #tpu.memory_space<vmem>>, vector<128x128xf32>
    %c0_2 = arith.constant 0 : index
    %c0_3 = arith.constant 0 : index
    %4 = vector.load %arg2[%c0_2, %c0_3] : memref<128x128xi8, #tpu.memory_space<vmem>>, vector<128x128xi8>
    %5 = arith.sitofp %4 : vector<128x128xi8> to vector<128x128xbf16>
    %c0_4 = arith.constant 0 : index
    %c0_5 = arith.constant 0 : index
    %6 = vector.load %arg3[%c0_4, %c0_5] : memref<128x128xbf16, #tpu.memory_space<vmem>>, vector<128x128xbf16>
    %cst = arith.constant dense<0.000000e+00> : vector<128x128xf32>
    %7 = tpu.matmul %5, %6, %cst {dimension_numbers = #tpu.dot_dimension_numbers<[1], [0], [0], [1], [0, 0, 1, 1], [], []>} : vector<128x128xbf16>, vector<128x128xbf16>, vector<128x128xf32> -> vector<128x128xf32>
    %8 = arith.addf %3, %7 : vector<128x128xf32>
    %c0_6 = arith.constant 0 : index
    %c0_7 = arith.constant 0 : index
    %9 = vector.load %arg7[%c0_6, %c0_7] : memref<128x128xf32, #tpu.memory_space<vmem>>, vector<128x128xf32>
    tpu.vector_store %arg7[%c0_6, %c0_7], %8 {strides = array<i32>} : memref<128x128xf32, #tpu.memory_space<vmem>>, vector<128x128xf32>,
    %c1_i32 = arith.constant 1 : i32
    %10 = arith.cmpi eq, %arg1, %c1_i32 : i32
    %11 = arith.extui %10 : i1 to i32
    %c0_i32_8 = arith.constant 0 : i32
    %12 = arith.cmpi ne, %11, %c0_i32_8 : i32
    scf.if %12 {
      %c0_9 = arith.constant 0 : index
      %c0_10 = arith.constant 0 : index
      %13 = vector.load %arg7[%c0_9, %c0_10] : memref<128x128xf32, #tpu.memory_space<vmem>>, vector<128x128xf32>
      %c0_11 = arith.constant 0 : index
      %c0_12 = arith.constant 0 : index
      %14 = vector.load %arg5[%c0_11, %c0_12] : memref<128x1xf32, #tpu.memory_space<vmem>>, vector<128x1xf32>
      %15 = vector.broadcast %14 : vector<128x1xf32> to vector<128x128xf32>
      %16 = arith.mulf %13, %15 : vector<128x128xf32>
      %c0_13 = arith.constant 0 : index
      %c0_14 = arith.constant 0 : index
      %17 = vector.load %arg4[%c0_13, %c0_14] : memref<128x128xf32, #tpu.memory_space<vmem>>, vector<128x128xf32>
      %18 = arith.addf %16, %17 : vector<128x128xf32>
      %19 = arith.mulf %18, %18 : vector<128x128xf32>
      %cst_15 = arith.constant dense<0.000000e+00> : vector<128xf32>
      %20 = vector.multi_reduction <add>, %19, %cst_15 [1] : vector<128x128xf32> to vector<128xf32>
      %21 = vector.shape_cast %20 : vector<128xf32> to vector<128x1xf32>
      %cst_16 = arith.constant 1.000000e-24 : f32
      %22 = vector.broadcast %cst_16 : f32 to vector<128x1xf32>
      %23 = arith.maximumf %21, %22 : vector<128x1xf32>
      %24 = math.rsqrt %23 : vector<128x1xf32>
      %25 = vector.broadcast %24 : vector<128x1xf32> to vector<128x128xf32>
      %26 = arith.mulf %18, %25 : vector<128x128xf32>
      %c0_17 = arith.constant 0 : index
      %c0_18 = arith.constant 0 : index
      %27 = vector.load %arg6[%c0_17, %c0_18] : memref<128x128xf32, #tpu.memory_space<vmem>>, vector<128x128xf32>
      tpu.vector_store %arg6[%c0_17, %c0_18], %26 {strides = array<i32>} : memref<128x128xf32, #tpu.memory_space<vmem>>, vector<128x128xf32>,
    } else {
    }
    return
  }
  func.func @transform_0(%arg0: i32, %arg1: i32) -> (i32, i32) {
    %c0_i32 = arith.constant 0 : i32
    return %arg0, %arg1 : i32, i32
  }
  func.func @transform_1(%arg0: i32, %arg1: i32) -> (i32, i32) {
    %c0_i32 = arith.constant 0 : i32
    %c0_i32_0 = arith.constant 0 : i32
    return %arg1, %c0_i32 : i32, i32
  }
  func.func @transform_2(%arg0: i32, %arg1: i32) -> (i32, i32) {
    %c0_i32 = arith.constant 0 : i32
    %c0_i32_0 = arith.constant 0 : i32
    return %arg0, %c0_i32 : i32, i32
  }
  func.func @transform_3(%arg0: i32, %arg1: i32) -> (i32, i32) {
    %c0_i32 = arith.constant 0 : i32
    %c0_i32_0 = arith.constant 0 : i32
    return %arg0, %c0_i32 : i32, i32
  }
  func.func @transform_4(%arg0: i32, %arg1: i32) -> (i32, i32) {
    %c0_i32 = arith.constant 0 : i32
    %c0_i32_0 = arith.constant 0 : i32
    return %arg0, %c0_i32 : i32, i32
  }
}

</mosaic_0001>

<bundles_post_ra>
// kernel: tpu_custom_call.1
= control target key start
LH: loop header
LB: loop body
LE: loop exit
PB: predicated region body
PF: predicated region fallthrough
CT: control target
= control target key end

     0   :  { %s2016_s0 = inlined_call_operand.hbm [shape: s8[256,256], index: 0, kind: input, shape index: {}]   ;;  %s2017_s1 = inlined_call_operand.hbm [shape: bf16[256,128], index: 1, kind: input, shape index: {}]   ;;  %s2018_s2 = inlined_call_operand.vmem [shape: f32[256,128], index: 2, kind: input, shape index: {}]   ;;  %s2019_s3 = inlined_call_operand.vmem [shape: f32[256,1], index: 3, kind: input, shape index: {}]   ;;  %s2020_s4 = inlined_call_operand.hbm [shape: f32[256,128], index: 4, kind: output, shape index: {}]  }
   0x1   :  { %2031 = sst [smem:[#allocation17_spill]] %s2016_s0 }
   0x2   :  { %2032 = sst [smem:[#allocation18_spill]] %s2017_s1 }
   0x3   :  { %2033 = sst [smem:[#allocation19_spill]] %s2018_s2 }
   0x4   :  { %2034 = sst [smem:[#allocation20_spill]] %s2019_s3 }
   0x5   :  { %2035 = sst [smem:[#allocation21_spill]] %s2020_s4 }
   0x6   :  { %9 = vsyncpa [#allocation4], 0 }
   0x7   :  { %11 = vsyncpa [#allocation4 + $0x1], 0 }
   0x8   :  { %12 = vsyncpa [#allocation7], 0 }
   0x9   :  { %14 = vsyncpa [#allocation7 + $0x1], 0 }
   0xa   :  { %15 = vsyncpa [#allocation5], 0 }
   0xb   :  { %17 = vsyncpa [#allocation5 + $0x1], 0  ;;  %s1516_s15 = smov 0   ;;  %s1518_s16 = smov 0  }
   0xc   :  { %s1520_s17 = smov 0   ;;  %s1522_s18 = smov 0  }
   0xd   :  { %s1524_s19 = smov 0   ;;  %s1526_s20 = smov 0  }
   0xe   :  { %s1528_s21 = smov 0   ;;  %s1530_s22 = smov 0  }
   0xf   :  { %s1532_s23 = smov 0   ;;  %s1534_s24 = smov 0  }
  0x10   :  { %s1536_s25 = smov 0   ;;  %s1538_s26 = smov 0  }
  0x11   :  { %s1540_s27 = smov 0   ;;  %s1542_s28 = smov 0  }
  0x12 LB: > { %2036 = sst [smem:[#allocation12_spill]] %s1425_s15  ;;  %s32_s29 = sadd.s32 1, %s1469_s26  ;;  %s1477_s28 = sphi %s1542_s28, %s23_s28   ;;  %s1473_s27 = sphi %s1540_s27, %s2083_s27   ;;  %s1469_s26 = sphi %s1538_s26, %s2082_s26   ;;  %s1465_s25 = sphi %s1536_s25, %s2081_s25   ;;  %s1461_s24 = sphi %s1534_s24, %s2080_s24   ;;  %s1457_s23 = sphi %s1532_s23, %s2079_s23   ;;  %s1453_s22 = sphi %s1530_s22, %s2078_s22   ;;  %s1449_s21 = sphi %s1528_s21, %s2077_s21   ;;  %s1445_s20 = sphi %s1526_s20, %s2076_s20   ;;  %s1441_s19 = sphi %s1524_s19, %s2075_s19   ;;  %s1437_s18 = sphi %s1522_s18, %s2074_s18   ;;  %s1433_s17 = sphi %s1520_s17, %s2073_s17   ;;  %s1429_s16 = sphi %s1518_s16, %s2072_s16   ;;  %s1425_s15 = sphi %s1516_s15, %s2071_s15  }
  0x13   : > { %2037 = sst [smem:[#allocation13_spill]] %s1461_s24  ;;  %s35_s30 = sadd.s32 1, %s1473_s27 }
  0x14   : > { %2038 = sst [smem:[#allocation14_spill]] %s1465_s25  ;;  %p33_p0 = scmp.ge.s32.totalorder %s32_s29, 2 }
  0x15   : > { %s44_s5 = sadd.s32 1, %s1457_s23  ;;  %p51_p1 = scmp.ne.s32.totalorder %s1457_s23, %s1453_s22 }
  0x16   : > { %p2025_p2 = scmp.eq.s32.totalorder %s1477_s28, 0  ;;  %s2085_s29 = smov (%p33_p0, %s32_s29), 0 }
  0x17   : > { %2039 = sst [smem:[#allocation15_spill]] %s2085_s29  ;;  %s2087_s30 = smov (!%p33_p0, %s35_s30), %s1473_s27 }
  0x18   : > { %s1597_s6 = ssub.s32 %s1469_s26, %s2085_s29  ;;  %p1601_p3 = por %p2025_p2, %p51_p1 }
  0x19   : > { %p37_p4 = scmp.ge.s32.totalorder %s2087_s30, 2  ;;  %s148_s8 = sadd.s32 1, %s1433_s17 }
  0x1a   : > { %p2024_p7 = scmp.lt.s32.totalorder %s1477_s28, 4  ;;  %s185_s10 = sand.u32 1, %s1457_s23  }
  0x1b   : > { %s2089_s30 = smov (%p37_p4, %s2087_s30), 0  ;;  %s988_s14 = sshll.u32 %s185_s10, 5 }
  0x1c   : > { %2041 = sst [smem:[#allocation16_spill]] %s2089_s30  ;;  %s39_s9 = ssub.s32 %s1473_s27, %s2089_s30 }
  0x1d   : > { %s41_s11 = sor.u32 %s1597_s6, %s39_s9  ;;  %p146_p8 = scmp.eq.s32.totalorder %s39_s9, 0 }
  0x1e   : > { %p42_p9 = scmp.eq.s32.totalorder %s41_s11, 0  ;;  %s1018_s29 = sshll.u32 %s1473_s27, 3 }
  0x1f   : > { %s1617_s12 = scalar_select %p146_p8, %s1433_s17, %s148_s8  }
  0x20   : > { %s1620_s13 = scalar_select %p42_p9, %s1457_s23, %s44_s5  }
  0x21   : > { %s195_s4 = sadd.s32 %s1469_s26, %s1018_s29  ;;  %s189_s3 = scalar_lea.vmem [#allocation3], %s988_s14 }
  0x22   : > { %s991_s24 = sshll.u32 %s195_s4, 7  ;;  %s198_s2 = sshll.u32 %s189_s3, 4  ;;  %s1629_s2 = int_to_ptr.vmem [resolvable:$true] %s198_s2 }
  0x23   : > { %s2042_s0 = sld [smem:[#allocation17_spill]]  ;;  %p1635_p10 = pnand %p2024_p7, %p1601_p3 }
  0x24   : > { %p995_p11 = scmp.ge.s32.totalorder %s1477_s28, 1  ;;  %s1640_s3 = scalar_lea.sflag [#allocation4], %s185_s10 }
  0x25   : > { %p1269_p13 = pneg %p1635_p10 }
  0x29   : > { %s1627_s15 = scalar_lea.hbm %s2042_s0, %s991_s24  ;;  %s1272_s25 = scalar_lea.hbm %s2042_s0, 2048 }
  0x2a   : > { %s1267_s1 = scalar_lea.hbm %s1627_s15, 512  ;;  %p1273_p3 = scmp.lt.u32.totalorder %s1627_s15, %s2042_s0 }
  0x2b   : > { %p1268_p12 = scmp.ne.s32.totalorder %s1627_s15, %s1267_s1  ;;  %p1274_p4 = scmp.lt.u32.totalorder %s1272_s25, %s1267_s1 }
  0x2c   : > { %p1276_p9 = scmp.lt.u32.totalorder %s1267_s1, %s1627_s15 }
  0x2d   : > { %p1270_p0 = pnand %p1269_p13, %p1268_p12  ;;  %p1275_p8 = por %p1274_p4, %p1273_p3 }
  0x2f   : > { %p1271_p1 = pneg %p1270_p0  ;;  %p1277_p7 = por %p1276_p9, %p1275_p8 }
  0x31   : > { %p1278_p2 = pnand %p1277_p7, %p1271_p1 }
  0x33   : > { %1281 = shalt.err (!%p1278_p2)
}
  0x34   : > { %s1282_s8 = scalar_lea.vmem %s1629_s2, 512  ;;  %s1479_s9 = smov [#allocation3]  }
  0x35   : > { %p1283_p12 = scmp.ne.s32.totalorder %s1629_s2, %s1282_s8  ;;  %s1287_s10 = sshll.u32 %s1479_s9, 4  ;;  %s1288_s10 = int_to_ptr.vmem [resolvable:$false] %s1287_s10 }
  0x36   : > { %s1289_s11 = scalar_lea.vmem %s1288_s10, 1024  ;;  %p1290_p6 = scmp.lt.s32.totalorder %s1629_s2, %s1288_s10 }
  0x37   : > { %p1285_p0 = pnand %p1283_p12, %p1269_p13  ;;  %p1291_p3 = scmp.lt.s32.totalorder %s1289_s11, %s1282_s8 }
  0x39   : > { %p1286_p5 = pneg %p1285_p0  ;;  %p1292_p4 = por %p1291_p3, %p1290_p6 }
  0x3b   : > { %p1293_p8 = pnand %p1292_p4, %p1286_p5 }
  0x3d   : > { %1296 = shalt.err (!%p1293_p8)
}
  0x3e   : > { %s1480_s14 = smov 256   ;;  %s1481_s1 = smov 128  }
  0x3f   : > { %s1482_s4 = smov 8   ;;  %s2044_s24 = sld [smem:[#allocation12_spill]] }
  0x40   : > { %1094 = dma.hbm_to_vmem [thread:$0]  (!%p1635_p10), %s1627_s15, 512, %s1629_s2, %s1640_s3, %s1480_s14, %s1481_s1, %s1482_s4  }
  0x41   : > { %p245_p2 = scmp.lt.s32.totalorder %s1477_s28, 5  ;;  %s984_s29 = sadd.s32 4294967295, %s1477_s28  }
  0x42   : > { %s985_s7 = sadd.s32 4294967294, %s1477_s28   ;;  %p58_p6 = scmp.eq.s32.totalorder %s984_s29, 0 }
  0x43   : > { %p1671_p5 = pnand %p995_p11, %p245_p2  ;;  %s70_s8 = sadd.s32 1, %s1445_s20 }
  0x44   : > { %p2046_p7 = scmp.eq.s32.totalorder %s1597_s6, 0  ;;  %p2047_p13 = scmp.ne.s32.totalorder %s1453_s22, %s1449_s21 }
  0x45   : > { %p77_p10 = scmp.ne.s32.totalorder %s1445_s20, %s1441_s19  ;;  %p83_p11 = scmp.ne.s32.totalorder %s1441_s19, %s1437_s18 }
  0x46   : > { %s1681_s9 = scalar_select %p2046_p7, %s1445_s20, %s70_s8  }
  0x47   : > { %p1686_p1 = por %p58_p6, %p2047_p13  ;;  %p158_p9 = scmp.ne.s32.totalorder %s1433_s17, %s1429_s16 }
  0x48   : > { %p2049_p12 = scmp.eq.s32.totalorder %s1477_s28, 0  ;;  %p159_p3 = scmp.eq.s32.totalorder %s984_s29, 3 }
  0x49   : > { %s2048_s5 = scalar_select %p1686_p1, 1, 0 }
  0x4a   : > { %p79_p0 = por %p77_p10, %p2049_p12  ;;  %p1698_p4 = por %p83_p11, %p58_p6 }
  0x4b   : > { %p164_p8 = scmp.ne.s32.totalorder %s1429_s16, %s2044_s24  ;;  %p1704_p2 = por %p159_p3, %p158_p9 }
  0x4c   : > { %s2050_s2 = scalar_select %p1698_p4, 1, 0 }
  0x4d   : > { %s2051_s15 = scalar_select %p1704_p2, 1, 0 }
  0x4e   : > { %p165_p7 = scmp.eq.s32.totalorder %s985_s7, 3  ;;  %s208_s21 = sand.u32 1, %s1445_s20  }
  0x4f   : > { %s1019_s6 = sshll.u32 %s1469_s26, 10  ;;  %s992_s18 = sshll.u32 %s208_s21, 6 }
  0x50   : > { %p1710_p13 = por %p165_p7, %p164_p8  ;;  %s2053_s14 = sld [smem:[#allocation18_spill]] }
  0x51   : > { %p2054_p6 = scmp.lt.s32.totalorder %s1477_s28, 4  ;;  %s212_s24 = scalar_lea.vmem [#allocation6], %s992_s18 }
  0x52   : > { %s2052_s3 = scalar_select %p1710_p13, 1, 0 }
  0x53   : > { %p1721_p10 = pnand %p2054_p6, %p79_p0  ;;  %s219_s29 = sshll.u32 %s212_s24, 4  ;;  %s1725_s29 = int_to_ptr.vmem [resolvable:$true] %s219_s29 }
  0x54   : > { %s1727_s7 = scalar_lea.sflag [#allocation7], %s208_s21 }
  0x55   : > { %p1299_p9 = pneg %p1721_p10 }
  0x56   : > { %s1717_s1 = scalar_lea.hbm %s2053_s14, %s1019_s6  ;;  %s1302_s11 = scalar_lea.hbm %s2053_s14, 2048 }
  0x57   : > { %s1297_s8 = scalar_lea.hbm %s1717_s1, 1024  ;;  %p1303_p0 = scmp.lt.u32.totalorder %s1717_s1, %s2053_s14 }
  0x58   : > { %p1298_p11 = scmp.ne.s32.totalorder %s1717_s1, %s1297_s8  ;;  %p1304_p8 = scmp.lt.u32.totalorder %s1302_s11, %s1297_s8 }
  0x59   : > { %p1306_p6 = scmp.lt.u32.totalorder %s1297_s8, %s1717_s1 }
  0x5a   : > { %p1300_p12 = pnand %p1299_p9, %p1298_p11  ;;  %p1305_p7 = por %p1304_p8, %p1303_p0 }
  0x5c   : > { %p1301_p3 = pneg %p1300_p12  ;;  %p1307_p13 = por %p1306_p6, %p1305_p7 }
  0x5e   : > { %p1308_p2 = pnand %p1307_p13, %p1301_p3 }
  0x60   : > { %1311 = shalt.err (!%p1308_p2)
}
  0x61   : > { %s1312_s21 = scalar_lea.vmem %s1725_s29, 1024  ;;  %s1483_s18 = smov [#allocation6]  }
  0x62   : > { %p1313_p11 = scmp.ne.s32.totalorder %s1725_s29, %s1312_s21  ;;  %s1317_s24 = sshll.u32 %s1483_s18, 4  ;;  %s1318_s24 = int_to_ptr.vmem [resolvable:$false] %s1317_s24 }
  0x63   : > { %s1319_s0 = scalar_lea.vmem %s1318_s24, 2048  ;;  %p1320_p1 = scmp.lt.s32.totalorder %s1725_s29, %s1318_s24 }
  0x64   : > { %p1315_p12 = pnand %p1313_p11, %p1299_p9  ;;  %p1321_p0 = scmp.lt.s32.totalorder %s1319_s0, %s1312_s21 }
  0x66   : > { %p1316_p4 = pneg %p1315_p12  ;;  %p1322_p8 = por %p1321_p0, %p1320_p1 }
  0x68   : > { %p1323_p7 = pnand %p1322_p8, %p1316_p4 }
  0x6a   : > { %1326 = shalt.err (!%p1323_p7)
}
  0x6b   : > { %s1484_s30 = smov 64   ;;  %s1485_s8 = smov 4  }
  0x6c   : > { %1097 = dma.hbm_to_vmem [thread:$0]  (!%p1721_p10), %s1717_s1, 1024, %s1725_s29, %s1727_s7, %s1484_s30, %s1484_s30, %s1485_s8  }
  0x6d   : > { %249 = sbr.rel (%p1671_p5) target bundleno = 708 (0x2c4), region = 36  ;;  %s251_s6 = sand.u32 (!%p1671_p5), 1, %s1453_s22  }
  0x6e   : > { %s996_s10 = sshll.u32 (!%p1671_p5), %s251_s6, 5  ;;  %s252_s11 = scalar_lea.sflag (!%p1671_p5), [#allocation4], %s251_s6 }
  0x6f   : > { %s1758_s21 = scalar_lea.vmem (!%p1671_p5), [#allocation3], %s996_s10  ;;  %p2056_p1 = scmp.ne.s32.totalorder (!%p1671_p5), %s2048_s5, 0 }
  0x74   : > { %1412 = dma.done.wait (%p2056_p1), %s252_s11, 512  }
  0x75   : > { %1414 = vsyncadd (%p2056_p1), %s252_s11, 4294966784  ;;  %s260_s18 = sand.u32 1, %s1441_s19   ;;  %p2057_p5 = scmp.ne.s32.totalorder %s2050_s2, 0 }
  0x76   : > { %s997_s4 = sshll.u32 %s260_s18, 6  ;;  %s261_s1 = scalar_lea.sflag [#allocation7], %s260_s18 }
  0x77   : > { %s1765_s29 = scalar_lea.vmem [#allocation6], %s997_s4 }
  0x78   : > { %1416 = dma.done.wait (%p2057_p5), %s261_s1, 1024  }
  0x79   : > { %1418 = vsyncadd (%p2057_p5), %s261_s1, 4294966272  ;;  %s2058_s25 = sld [smem:[#allocation14_spill]]  ;;  %s301_s7 = sand.u32 1, %s1429_s16  }
  0x7a   : > { %s998_s5 = sshll.u32 %s301_s7, 7  ;;  %s2059_s6 = sld [smem:[#allocation19_spill]] }
  0x7b   : > { %s2060_s4 = sld [smem:[#allocation20_spill]]  ;;  %s1785_s1 = scalar_lea.vmem [#allocation8], %s998_s5 }
  0x7c   : > { %s2061_s14 = sld [smem:[#allocation13_spill]] }
  0x7f   : > { %s999_s24 = sshll.u32 %s2058_s25, 4 }
  0x80   : > { %p307_p4 = scmp.lt.s32.totalorder %s999_s24, 31 }
  0x82   : > { %s2091_s24 = smov (!%p307_p4, %s999_s24), 31  ;;  %p1003_p2 = scmp.ne.s32.totalorder %s2061_s14, 0 }
  0x83   : > { %s1000_s0 = sshll.u32 %s2091_s24, 3  ;;  %v1486_v0 = vmov (!%p1003_p2), 0.0  }
  0x84   : > { %s1778_s10 = scalar_lea.vmem %s2059_s6, %s1000_s0  ;;  %s1783_s2 = scalar_lea.vmem %s2060_s4, %s1000_s0  ;;  %324 = vst [vmem:[#allocation2] sm:$0xff] (!%p1003_p2), %v1486_v0  ;;  %325 = vst [vmem:[#allocation2 + $0x8] sm:$0xff] (!%p1003_p2), %v1486_v0 }
  0x85   : > { %323 = sbr.rel (%p1003_p2) target bundleno = 140 (0x8c), region = 48  ;;  %326 = vst [vmem:[#allocation2 + $0x10] sm:$0xff] (!%p1003_p2), %v1486_v0  ;;  %327 = vst [vmem:[#allocation2 + $0x18] sm:$0xff] (!%p1003_p2), %v1486_v0 }
  0x86   : > { %328 = vst [vmem:[#allocation2 + $0x20] sm:$0xff] (!%p1003_p2), %v1486_v0  ;;  %329 = vst [vmem:[#allocation2 + $0x28] sm:$0xff] (!%p1003_p2), %v1486_v0 }
  0x87   : > { %330 = vst [vmem:[#allocation2 + $0x30] sm:$0xff] (!%p1003_p2), %v1486_v0  ;;  %331 = vst [vmem:[#allocation2 + $0x38] sm:$0xff] (!%p1003_p2), %v1486_v0 }
  0x88   : > { %332 = vst [vmem:[#allocation2 + $0x40] sm:$0xff] (!%p1003_p2), %v1486_v0  ;;  %333 = vst [vmem:[#allocation2 + $0x48] sm:$0xff] (!%p1003_p2), %v1486_v0 }
  0x89   : > { %334 = vst [vmem:[#allocation2 + $0x50] sm:$0xff] (!%p1003_p2), %v1486_v0  ;;  %335 = vst [vmem:[#allocation2 + $0x58] sm:$0xff] (!%p1003_p2), %v1486_v0 }
  0x8a   : > { %336 = vst [vmem:[#allocation2 + $0x60] sm:$0xff] (!%p1003_p2), %v1486_v0  ;;  %337 = vst [vmem:[#allocation2 + $0x68] sm:$0xff] (!%p1003_p2), %v1486_v0 }
  0x8b   : > { %338 = vst [vmem:[#allocation2 + $0x70] sm:$0xff] (!%p1003_p2), %v1486_v0  ;;  %339 = vst [vmem:[#allocation2 + $0x78] sm:$0xff] (!%p1003_p2), %v1486_v0 }
  0x8c PF: > { %v1225_v1 = vld [vmem:[%s1765_s29] sm:$0xff]   ;;  %v1226_v2 = vld [vmem:[%s1765_s29 + $0x8] sm:$0xff]   ;;  %v1227_v3 = vld [vmem:[%s1765_s29 + $0x10] sm:$0xff]   ;;  %s2062_s14 = sld [smem:[#allocation13_spill]] }
  0x8d   : > { %1037 = vmatprep.subr.bf16.mxu0 %v1225_v1  ;;  %1069 = vmatprep.subr.bf16.mxu1 %v1225_v1  ;;  %v1228_v4 = vld [vmem:[%s1765_s29 + $0x18] sm:$0xff]   ;;  %v356_v5 = vld [vmem:[%s1758_s21] sm:$0xff]  ;;  %v358_v6 = vld [vmem:[%s1758_s21 + $0x10] sm:$0xff] }
  0x8e   : > { %1038 = vmatpush3.bf16.msra.mxu0 %v1225_v1  ;;  %1077 = vmatpush3.bf16.msra.mxu1 %v1225_v1  ;;  %v360_v7 = vunpack.c.l.s8.bf16 %v356_v5  ;;  %v364_v8 = vunpack.c.l.s8.bf16 %v358_v6  ;;  %v1229_v9 = vld [vmem:[%s1765_s29 + $0x20] sm:$0xff]   ;;  %v1230_v10 = vld [vmem:[%s1765_s29 + $0x28] sm:$0xff]   ;;  %v1231_v11 = vld [vmem:[%s1765_s29 + $0x30] sm:$0xff]   ;;  %v361_v15 = vunpack.c.h.s8.bf16 %v356_v5  ;;  %v365_v16 = vunpack.c.h.s8.bf16 %v358_v6 }
  0x8f   : > { %1039 = vmatprep.subr.bf16.mxu0 %v1226_v2  ;;  %1070 = vmatprep.subr.bf16.mxu1 %v1226_v2  ;;  %v1232_v12 = vld [vmem:[%s1765_s29 + $0x38] sm:$0xff]   ;;  %v357_v13 = vld [vmem:[%s1758_s21 + $0x8] sm:$0xff]  ;;  %v342_v21 = vld [vmem:[#allocation2 + $0x10] sm:$0xff] }
  0x90   : > { %1053 = vmatprep.mubr.bf16.mxu0 %v360_v7  ;;  %1061 = vmatprep.mubr.bf16.mxu1 %v364_v8  ;;  %v359_v14 = vld [vmem:[%s1758_s21 + $0x18] sm:$0xff]  ;;  %v362_v17 = vunpack.c.l.s8.bf16 %v357_v13  ;;  %v363_v19 = vunpack.c.h.s8.bf16 %v357_v13  ;;  %v350_v22 = vld [vmem:[#allocation2 + $0x50] sm:$0xff]  ;;  %v340_v23 = vld [vmem:[#allocation2] sm:$0xff] }
  0x91   : > { %v366_v18 = vunpack.c.l.s8.bf16 %v359_v14  ;;  %v367_v20 = vunpack.c.h.s8.bf16 %v359_v14  ;;  %v348_v24 = vld [vmem:[#allocation2 + $0x40] sm:$0xff]  ;;  %v343_v27 = vld [vmem:[#allocation2 + $0x18] sm:$0xff]  ;;  %v341_v33 = vld [vmem:[#allocation2 + $0x8] sm:$0xff] }
  0x92   : > { %1040 = vmatpush3.bf16.msra.mxu0 %v1226_v2  ;;  %1078 = vmatpush3.bf16.msra.mxu1 %v1226_v2  ;;  %v351_v28 = vld [vmem:[#allocation2 + $0x58] sm:$0xff]  ;;  %v349_v34 = vld [vmem:[#allocation2 + $0x48] sm:$0xff]  ;;  %v346_v45 = vld [vmem:[#allocation2 + $0x30] sm:$0xff]  ;;  %p1012_p13 = scmp.ne.s32.totalorder %s2062_s14, 1 }
  0x93   : > { %1041 = vmatprep.subr.bf16.mxu0 %v1227_v3  ;;  %1071 = vmatprep.subr.bf16.mxu1 %v1227_v3  ;;  %v354_v46 = vld [vmem:[#allocation2 + $0x70] sm:$0xff]  ;;  %v344_v47 = vld [vmem:[#allocation2 + $0x20] sm:$0xff]  ;;  %v347_v51 = vld [vmem:[#allocation2 + $0x38] sm:$0xff]  ;;  %v1487_v7 = vmov (!%p1012_p13), 0  }
  0x94   : > { %v352_v48 = vld [vmem:[#allocation2 + $0x60] sm:$0xff]  ;;  %v355_v52 = vld [vmem:[#allocation2 + $0x78] sm:$0xff]  ;;  %v345_v57 = vld [vmem:[#allocation2 + $0x28] sm:$0xff]  ;;  %1234 = vset.pattern.permute.xlu1 (!%p1012_p13), %v1487_v7  ;;  %1233 = vset.pattern.permute.xlu0 (!%p1012_p13), %v1487_v7 }
  0x95   : > { %v353_v58 = vld [vmem:[#allocation2 + $0x68] sm:$0xff]  ;;  %v583_v5 = vld [vmem:[%s1783_s2 + $0x10] sm:$0xff] (!%p1012_p13)  ;;  %v581_v6 = vld [vmem:[%s1783_s2] sm:$0xff] (!%p1012_p13) }
  0x96   : > { %1042 = vmatpush3.bf16.msra.mxu0 %v1227_v3  ;;  %1079 = vmatpush3.bf16.msra.mxu1 %v1227_v3  ;;  %v584_v8 = vld [vmem:[%s1783_s2 + $0x18] sm:$0xff] (!%p1012_p13)  ;;  %v587_v13 = vld [vmem:[%s1783_s2 + $0x30] sm:$0xff] (!%p1012_p13)  ;;  %v590_v14 = vld [vmem:[%s1783_s2 + $0x48] sm:$0xff] (!%p1012_p13) }
  0x97   : > { %1043 = vmatprep.subr.bf16.mxu0 %v1228_v4  ;;  %1072 = vmatprep.subr.bf16.mxu1 %v1228_v4 }
  0x98   : > { %609 = vperm.xlu1 (!%p1012_p13), %1234, %v583_v5   ;;  %599 = vperm.xlu0 (!%p1012_p13), %1233, %v581_v6   ;;  %v701_v6 = vld [vmem:[%s1778_s10 + $0x40] sm:$0xff] (!%p1012_p13) }
  0x9a   : > { %1044 = vmatpush3.bf16.msra.mxu0 %v1228_v4  ;;  %1080 = vmatpush3.bf16.msra.mxu1 %v1228_v4 }
  0x9b   : > { %1045 = vmatprep.subr.bf16.mxu0 %v1229_v9  ;;  %1073 = vmatprep.subr.bf16.mxu1 %v1229_v9 }
  0x9c   : > { %614 = vperm.xlu1 (!%p1012_p13), %1234, %v584_v8  }
  0x9e   : > { %1046 = vmatpush3.bf16.msra.mxu0 %v1229_v9  ;;  %1081 = vmatpush3.bf16.msra.mxu1 %v1229_v9  ;;  %v582_v9 = vld [vmem:[%s1783_s2 + $0x8] sm:$0xff] (!%p1012_p13) }
  0x9f   : > { %1047 = vmatprep.subr.bf16.mxu0 %v1230_v10  ;;  %1074 = vmatprep.subr.bf16.mxu1 %v1230_v10 }
  0xa0   : > { %604 = vperm.xlu0 (!%p1012_p13), %1233, %v582_v9  }
  0xa2   : > { %1048 = vmatpush3.bf16.msra.mxu0 %v1230_v10  ;;  %1082 = vmatpush3.bf16.msra.mxu1 %v1230_v10  ;;  %v586_v10 = vld [vmem:[%s1783_s2 + $0x28] sm:$0xff] (!%p1012_p13) }
  0xa3   : > { %1049 = vmatprep.subr.bf16.mxu0 %v1231_v11  ;;  %1075 = vmatprep.subr.bf16.mxu1 %v1231_v11 }
  0xa4   : > { %624 = vperm.xlu1 (!%p1012_p13), %1234, %v586_v10  }
  0xa6   : > { %1050 = vmatpush3.bf16.msra.mxu0 %v1231_v11  ;;  %1083 = vmatpush3.bf16.msra.mxu1 %v1231_v11  ;;  %v585_v11 = vld [vmem:[%s1783_s2 + $0x20] sm:$0xff] (!%p1012_p13) }
  0xa7   : > { %1051 = vmatprep.subr.bf16.mxu0 %v1232_v12  ;;  %1076 = vmatprep.subr.bf16.mxu1 %v1232_v12 }
  0xa8   : > { %619 = vperm.xlu0 (!%p1012_p13), %1233, %v585_v11  }
  0xaa   : > { %1052 = vmatpush3.bf16.msra.mxu0 %v1232_v12  ;;  %1084 = vmatpush3.bf16.msra.mxu1 %v1232_v12  ;;  %v588_v12 = vld [vmem:[%s1783_s2 + $0x38] sm:$0xff] (!%p1012_p13) }
  0xab   : > { %634 = vperm.xlu1 (!%p1012_p13), %1234, %v588_v12   ;;  %v702_v12 = vld [vmem:[%s1778_s10 + $0x48] sm:$0xff] (!%p1012_p13) }
  0xac   : > { %629 = vperm.xlu0 (!%p1012_p13), %1233, %v587_v13  }
  0xad   : > { %1054 = vmatmul.mubr.bf16.vlgmr.msra.gmra.mrb[0].mxu0 %v361_v15  ;;  %1062 = vmatmul.mubr.bf16.vlgmr.msra.gmra.mrb[0].mxu1 %v365_v16  ;;  %v589_v15 = vld [vmem:[%s1783_s2 + $0x40] sm:$0xff] (!%p1012_p13)  ;;  %v592_v16 = vld [vmem:[%s1783_s2 + $0x58] sm:$0xff] (!%p1012_p13) }
  0xae   : > { %1057 = vmatprep.mubr.bf16.mxu0 %v362_v17  ;;  %1065 = vmatprep.mubr.bf16.mxu1 %v366_v18  ;;  %v591_v17 = vld [vmem:[%s1783_s2 + $0x50] sm:$0xff] (!%p1012_p13)  ;;  %v594_v18 = vld [vmem:[%s1783_s2 + $0x68] sm:$0xff] (!%p1012_p13) }
  0xaf   : > { %644 = vperm.xlu1 (!%p1012_p13), %1234, %v590_v14  }
  0xb0   : > { %639 = vperm.xlu0 (!%p1012_p13), %1233, %v589_v15  }
  0xb3   : > { %654 = vperm.xlu1 (!%p1012_p13), %1234, %v592_v16  }
  0xb4   : > { %649 = vperm.xlu0 (!%p1012_p13), %1233, %v591_v17   ;;  %v703_v17 = vld [vmem:[%s1778_s10 + $0x50] sm:$0xff] (!%p1012_p13) }
  0xb5   : > { %1058 = vmatmul.mubr.bf16.gmra.mrb[4].mxu0 %v363_v19  ;;  %1066 = vmatmul.mubr.bf16.gmra.mrb[4].mxu1 %v367_v20  ;;  %v593_v19 = vld [vmem:[%s1783_s2 + $0x60] sm:$0xff] (!%p1012_p13)  ;;  %v596_v20 = vld [vmem:[%s1783_s2 + $0x78] sm:$0xff] (!%p1012_p13) }
  0xb7   : > { %664 = vperm.xlu1 (!%p1012_p13), %1234, %v594_v18  }
  0xb8   : > { %659 = vperm.xlu0 (!%p1012_p13), %1233, %v593_v19  }
  0xbb   : > { %674 = vperm.xlu1 (!%p1012_p13), %1234, %v596_v20  }
 0x180   : > { %v1055_v25 = vpop.f32.mrb[0].mxu0  ;;  %v1063_v26 = vpop.f32.mrb[0].mxu1 }
 0x181   : > { %v531_v29 = vadd.f32 %v1055_v25, %v342_v21  ;;  %v539_v30 = vadd.f32 %v1063_v26, %v350_v22  ;;  %v466_v31 = vpop.f32.mrb[1].mxu0  ;;  %v498_v32 = vpop.f32.mrb[1].mxu1  ;;  %v595_v21 = vld [vmem:[%s1783_s2 + $0x70] sm:$0xff] (!%p1012_p13)  ;;  %v693_v26 = vld [vmem:[%s1778_s10] sm:$0xff] (!%p1012_p13) }
 0x182   : > { %v529_v35 = vadd.f32 %v466_v31, %v340_v23  ;;  %v537_v36 = vadd.f32 %v498_v32, %v348_v24  ;;  %v1056_v37 = vpop.f32.mrb[2].mxu0  ;;  %v1064_v38 = vpop.f32.mrb[2].mxu1  ;;  %669 = vperm.xlu0 (!%p1012_p13), %1233, %v595_v21   ;;  %v695_v24 = vld [vmem:[%s1778_s10 + $0x10] sm:$0xff] (!%p1012_p13)  ;;  %v704_v21 = vld [vmem:[%s1778_s10 + $0x58] sm:$0xff] (!%p1012_p13) }
 0x183   : > { %547 = vst [vmem:[#allocation2 + $0x10] sm:$0xff] %v531_v29  ;;  %555 = vst [vmem:[#allocation2 + $0x50] sm:$0xff] %v539_v30  ;;  %v532_v39 = vadd.f32 %v1056_v37, %v343_v27  ;;  %v540_v40 = vadd.f32 %v1064_v38, %v351_v28  ;;  %v469_v41 = vpop.f32.mrb[3].mxu0  ;;  %v501_v42 = vpop.f32.mrb[3].mxu1  ;;  %v696_v37 = vld [vmem:[%s1778_s10 + $0x18] sm:$0xff] (!%p1012_p13) }
 0x184   : > { %545 = vst [vmem:[#allocation2] sm:$0xff] %v529_v35  ;;  %553 = vst [vmem:[#allocation2 + $0x40] sm:$0xff] %v537_v36  ;;  %v530_v43 = vadd.f32 %v469_v41, %v341_v33  ;;  %v538_v44 = vadd.f32 %v501_v42, %v349_v34  ;;  %v610_v25 = vpop.permute.xlu1 (!%p1012_p13), %609  ;;  %v600_v27 = vpop.permute.xlu0 (!%p1012_p13), %599  ;;  %v694_v35 = vld [vmem:[%s1778_s10 + $0x8] sm:$0xff] (!%p1012_p13) }
 0x185   : > { %548 = vst [vmem:[#allocation2 + $0x18] sm:$0xff] %v532_v39  ;;  %556 = vst [vmem:[#allocation2 + $0x58] sm:$0xff] %v540_v40 }
 0x186   : > { %546 = vst [vmem:[#allocation2 + $0x8] sm:$0xff] %v530_v43  ;;  %554 = vst [vmem:[#allocation2 + $0x48] sm:$0xff] %v538_v44 }
 0x188   : > { %v1059_v49 = vpop.f32.mrb[4].mxu0  ;;  %v1067_v50 = vpop.f32.mrb[4].mxu1  ;;  %564 = sbr.rel (%p1012_p13) target bundleno = 680 (0x2a8), region = 52 }
 0x189   : > { %v535_v53 = vadd.f32 %v1059_v49, %v346_v45  ;;  %v543_v54 = vadd.f32 %v1067_v50, %v354_v46  ;;  %v482_v55 = vpop.f32.mrb[5].mxu0  ;;  %v514_v56 = vpop.f32.mrb[5].mxu1 }
 0x18a   : > { %v533_v59 = vadd.f32 %v482_v55, %v344_v47  ;;  %v541_v60 = vadd.f32 %v514_v56, %v352_v48  ;;  %v1060_v61 = vpop.f32.mrb[6].mxu0  ;;  %v1068_v62 = vpop.f32.mrb[6].mxu1  ;;  %v567_v22 = vld [vmem:[#allocation2 + $0x10] sm:$0xff] (!%p1012_p13)  ;;  %v697_v47 = vld [vmem:[%s1778_s10 + $0x20] sm:$0xff] (!%p1012_p13) }
 0x18b   : > { %551 = vst [vmem:[#allocation2 + $0x30] sm:$0xff] %v535_v53  ;;  %559 = vst [vmem:[#allocation2 + $0x70] sm:$0xff] %v543_v54  ;;  %v536_v63 = vadd.f32 %v1060_v61, %v347_v51  ;;  %v544_v0 = vadd.f32 %v1068_v62, %v355_v52  ;;  %v485_v1 = vpop.f32.mrb[7].mxu0  ;;  %v517_v2 = vpop.f32.mrb[7].mxu1  ;;  %v565_v23 = vld [vmem:[#allocation2] sm:$0xff] (!%p1012_p13)  ;;  %v679_v28 = vmul.f32 (!%p1012_p13), %v610_v25, %v567_v22  ;;  %v698_v52 = vld [vmem:[%s1778_s10 + $0x28] sm:$0xff] (!%p1012_p13) }
 0x18c   : > { %549 = vst [vmem:[#allocation2 + $0x20] sm:$0xff] %v533_v59  ;;  %557 = vst [vmem:[#allocation2 + $0x60] sm:$0xff] %v541_v60  ;;  %v534_v3 = vadd.f32 %v485_v1, %v345_v57  ;;  %v542_v4 = vadd.f32 %v517_v2, %v353_v58  ;;  %v677_v29 = vmul.f32 (!%p1012_p13), %v600_v27, %v565_v23  ;;  %v568_v30 = vld [vmem:[#allocation2 + $0x18] sm:$0xff] (!%p1012_p13)  ;;  %v615_v34 = vpop.permute.xlu1 (!%p1012_p13), %614  ;;  %v605_v36 = vpop.permute.xlu0 (!%p1012_p13), %604  ;;  %v699_v57 = vld [vmem:[%s1778_s10 + $0x30] sm:$0xff] (!%p1012_p13) }
 0x18d   : > { %552 = vst [vmem:[#allocation2 + $0x38] sm:$0xff] %v536_v63  ;;  %560 = vst [vmem:[#allocation2 + $0x78] sm:$0xff] %v544_v0  ;;  %v566_v31 = vld [vmem:[#allocation2 + $0x8] sm:$0xff] (!%p1012_p13)  ;;  %v1819_v32 = vadd.f32 (!%p1012_p13), %v695_v24, %v679_v28  ;;  %v680_v38 = vmul.f32 (!%p1012_p13), %v615_v34, %v568_v30  ;;  %v700_v61 = vld [vmem:[%s1778_s10 + $0x38] sm:$0xff] (!%p1012_p13) }
 0x18e   : > { %550 = vst [vmem:[#allocation2 + $0x28] sm:$0xff] %v534_v3  ;;  %558 = vst [vmem:[#allocation2 + $0x68] sm:$0xff] %v542_v4  ;;  %v1821_v33 = vadd.f32 (!%p1012_p13), %v693_v26, %v677_v29  ;;  %v678_v39 = vmul.f32 (!%p1012_p13), %v605_v36, %v566_v31  ;;  %v574_v1 = vld [vmem:[#allocation2 + $0x48] sm:$0xff] (!%p1012_p13)  ;;  %v573_v2 = vld [vmem:[#allocation2 + $0x40] sm:$0xff] (!%p1012_p13) }
 0x18f   : > { %v727_v44 = vmul.f32 %v1819_v32, %v1819_v32  ;;  %v1831_v45 = vadd.f32 %v696_v37, %v680_v38  ;;  %v576_v13 = vld [vmem:[#allocation2 + $0x58] sm:$0xff]  ;;  %v575_v14 = vld [vmem:[#allocation2 + $0x50] sm:$0xff]  ;;  %v705_v30 = vld [vmem:[%s1778_s10 + $0x60] sm:$0xff] }
 0x190   : > { %v725_v40 = vmul.f32 %v1821_v33, %v1821_v33  ;;  %v1827_v43 = vadd.f32 %v694_v35, %v678_v39  ;;  %v625_v46 = vpop.permute.xlu1 %624  ;;  %v620_v48 = vpop.permute.xlu0 %619  ;;  %v706_v38 = vld [vmem:[%s1778_s10 + $0x68] sm:$0xff] }
 0x191   : > { %v728_v59 = vmul.f32 %v1831_v45, %v1831_v45 }
 0x192   : > { %v726_v51 = vmul.f32 %v1827_v43, %v1827_v43  ;;  %v571_v54 = vld [vmem:[#allocation2 + $0x30] sm:$0xff] }
 0x193   : > { %v569_v42 = vld [vmem:[#allocation2 + $0x20] sm:$0xff] }
 0x194   : > { %v681_v50 = vmul.f32 %v620_v48, %v569_v42  ;;  %v572_v53 = vld [vmem:[#allocation2 + $0x38] sm:$0xff]  ;;  %743 = vadd.xlane.f32.xlu1 %v726_v51  ;;  %v635_v56 = vpop.permute.xlu1 %634  ;;  %v630_v58 = vpop.permute.xlu0 %629  ;;  %v577_v26 = vld [vmem:[#allocation2 + $0x60] sm:$0xff] }
 0x195   : > { %v570_v41 = vld [vmem:[#allocation2 + $0x28] sm:$0xff]  ;;  %v684_v62 = vmul.f32 %v635_v56, %v572_v53  ;;  %v683_v63 = vmul.f32 %v630_v58, %v571_v54  ;;  %v580_v39 = vld [vmem:[#allocation2 + $0x78] sm:$0xff] }
 0x196   : > { %v682_v49 = vmul.f32 %v625_v46, %v570_v41  ;;  %v1837_v55 = vadd.f32 %v697_v47, %v681_v50  ;;  %v578_v25 = vld [vmem:[#allocation2 + $0x68] sm:$0xff] }
 0x197   : > { %v1847_v3 = vadd.f32 %v699_v57, %v683_v63  ;;  %v1849_v4 = vadd.f32 %v700_v61, %v684_v62 }
 0x198   : > { %v1842_v60 = vadd.f32 %v698_v52, %v682_v49  ;;  %v729_v0 = vmul.f32 %v1837_v55, %v1837_v55  ;;  %v645_v5 = vpop.permute.xlu1 %644  ;;  %v640_v7 = vpop.permute.xlu0 %639  ;;  %v708_v52 = vld [vmem:[%s1778_s10 + $0x78] sm:$0xff] }
 0x199   : > { %v686_v8 = vmul.f32 %v645_v5, %v574_v1  ;;  %v685_v9 = vmul.f32 %v640_v7, %v573_v2  ;;  %v731_v10 = vmul.f32 %v1847_v3, %v1847_v3  ;;  %v732_v19 = vmul.f32 %v1849_v4, %v1849_v4 }
 0x19a   : > { %749 = vadd.xlane.f32.xlu1 %v729_v0  ;;  %v730_v11 = vmul.f32 %v1842_v60, %v1842_v60 }
 0x19b   : > { %v1857_v15 = vadd.f32 %v701_v6, %v685_v9  ;;  %v1862_v20 = vadd.f32 %v702_v12, %v686_v8 }
 0x19c   : > { %v655_v16 = vpop.permute.xlu1 %654  ;;  %v650_v18 = vpop.permute.xlu0 %649 }
 0x19d   : > { %v688_v22 = vmul.f32 %v655_v16, %v576_v13  ;;  %v687_v23 = vmul.f32 %v650_v18, %v575_v14  ;;  %v733_v24 = vmul.f32 %v1857_v15, %v1857_v15  ;;  %v734_v37 = vmul.f32 %v1862_v20, %v1862_v20 }
 0x19e   : > { %753 = vadd.xlane.f32.xlu1 %v731_v10 }
 0x19f   : > { %v1867_v27 = vadd.f32 %v703_v17, %v687_v23  ;;  %v1869_v28 = vadd.f32 %v704_v21, %v688_v22 }
 0x1a0   : > { %v665_v29 = vpop.permute.xlu1 %664  ;;  %v660_v31 = vpop.permute.xlu0 %659 }
 0x1a1   : > { %741 = vadd.xlane.f32.xlu0 %v725_v40  ;;  %v690_v34 = vmul.f32 %v665_v29, %v578_v25  ;;  %v689_v35 = vmul.f32 %v660_v31, %v577_v26  ;;  %v735_v36 = vmul.f32 %v1867_v27, %v1867_v27  ;;  %v579_v40 = vld [vmem:[#allocation2 + $0x70] sm:$0xff]  ;;  %v736_v47 = vmul.f32 %v1869_v28, %v1869_v28 }
 0x1a2   : > { %757 = vadd.xlane.f32.xlu1 %v733_v24 }
 0x1a3   : > { %v1877_v41 = vadd.f32 %v705_v30, %v689_v35  ;;  %v1882_v48 = vadd.f32 %v706_v38, %v690_v34 }
 0x1a4   : > { %v675_v42 = vpop.permute.xlu1 %674 }
 0x1a5   : > { %745 = vadd.xlane.f32.xlu0 %v727_v44  ;;  %v707_v44 = vld [vmem:[%s1778_s10 + $0x70] sm:$0xff]  ;;  %v692_v49 = vmul.f32 %v675_v42, %v580_v39  ;;  %v737_v51 = vmul.f32 %v1877_v41, %v1877_v41  ;;  %v738_v57 = vmul.f32 %v1882_v48, %v1882_v48 }
 0x1a6   : > { %761 = vadd.xlane.f32.xlu1 %v735_v36 }
 0x1a7   : > { %v1889_v54 = vadd.f32 %v708_v52, %v692_v49 }
 0x1a9   : > { %747 = vadd.xlane.f32.xlu0 %v728_v59  ;;  %v740_v58 = vmul.f32 %v1889_v54, %v1889_v54 }
 0x1aa   : > { %765 = vadd.xlane.f32.xlu1 %v737_v51 }
 0x1ad   : > { %751 = vadd.xlane.f32.xlu0 %v730_v11 }
 0x1b1   : > { %755 = vadd.xlane.f32.xlu0 %v732_v19 }
 0x1b5   : > { %759 = vadd.xlane.f32.xlu0 %v734_v37 }
 0x1b9   : > { %763 = vadd.xlane.f32.xlu0 %v736_v47 }
 0x1bd   : > { %767 = vadd.xlane.f32.xlu0 %v738_v57 }
 0x1c1   : > { %771 = vadd.xlane.f32.xlu0 %v740_v58 }
 0x201   : > { %v670_v46 = vpop.permute.xlu0 %669 }
 0x202   : > { %v691_v50 = vmul.f32 %v670_v46, %v579_v40 }
 0x204   : > { %v1887_v53 = vadd.f32 %v707_v44, %v691_v50 }
 0x206   : > { %v739_v56 = vmul.f32 %v1887_v53, %v1887_v53 }
 0x208   : > { %769 = vadd.xlane.f32.xlu1 %v739_v56 }
 0x221   : > { %v744_v62 = vpop.xlane.xlu1 %743 }
 0x222   : > { %v774_v0 = vmax.f32 %v744_v62, 1e-24 }
 0x227   : > { %v750_v2 = vpop.xlane.xlu1 %749 }
 0x228   : > { %v777_v6 = vmax.f32 %v750_v2, 1e-24 }
 0x22b   : > { %v754_v8 = vpop.xlane.xlu1 %753 }
 0x22c   : > { %v779_v11 = vmax.f32 %v754_v8, 1e-24 }
 0x22e   : > { %v742_v59 = vpop.xlane.xlu0 %741 }
 0x22f   : > { %v773_v61 = vmax.f32 %v742_v59, 1e-24  ;;  %v758_v14 = vpop.xlane.xlu1 %757 }
 0x230   : > { %v781_v18 = vmax.f32 %v758_v14, 1e-24 }
 0x231   : > { %1235 = vrsqrt.f32 %v773_v61 }
 0x232   : > { %v746_v63 = vpop.xlane.xlu0 %745  ;;  %1237 = vrsqrt.f32 %v774_v0 }
 0x233   : > { %v775_v1 = vmax.f32 %v746_v63, 1e-24 }
 0x235   : > { %1239 = vrsqrt.f32 %v775_v1 }
 0x236   : > { %v748_v5 = vpop.xlane.xlu0 %747  ;;  %1241 = vrsqrt.f32 %v777_v6 }
 0x237   : > { %v776_v7 = vmax.f32 %v748_v5, 1e-24 }
 0x239   : > { %1243 = vrsqrt.f32 %v776_v7 }
 0x23a   : > { %v752_v9 = vpop.xlane.xlu0 %751  ;;  %1245 = vrsqrt.f32 %v779_v11 }
 0x23b   : > { %v1236_v10 = vpop.eup %1235  ;;  %v778_v12 = vmax.f32 %v752_v9, 1e-24 }
 0x23c   : > { %v805_v13 = vmul.f32 %v1236_v10, %v1821_v33  ;;  %v1238_v17 = vpop.eup %1237  ;;  %v762_v33 = vpop.xlane.xlu1 %761 }
 0x23d   : > { %1247 = vrsqrt.f32 %v778_v12  ;;  %v806_v22 = vmul.f32 %v1238_v17, %v1827_v43  ;;  %v783_v26 = vmax.f32 %v762_v33, 1e-24 }
 0x23e   : > { %821 = vst [vmem:[%s1785_s1] sm:$0xff] %v805_v13  ;;  %v756_v16 = vpop.xlane.xlu0 %755  ;;  %1249 = vrsqrt.f32 %v781_v18 }
 0x23f   : > { %v780_v19 = vmax.f32 %v756_v16, 1e-24  ;;  %v1240_v21 = vpop.eup %1239  ;;  %822 = vst [vmem:[%s1785_s1 + $0x8] sm:$0xff] %v806_v22 }
 0x240   : > { %v807_v23 = vmul.f32 %v1240_v21, %v1819_v32  ;;  %v1242_v25 = vpop.eup %1241  ;;  %v766_v32 = vpop.xlane.xlu1 %765 }
 0x241   : > { %1251 = vrsqrt.f32 %v780_v19  ;;  %v809_v31 = vmul.f32 %v1242_v25, %v1837_v55  ;;  %v785_v36 = vmax.f32 %v766_v32, 1e-24 }
 0x242   : > { %v760_v24 = vpop.xlane.xlu0 %759  ;;  %823 = vst [vmem:[%s1785_s1 + $0x10] sm:$0xff] %v807_v23  ;;  %1253 = vrsqrt.f32 %v783_v26 }
 0x243   : > { %v782_v29 = vmax.f32 %v760_v24, 1e-24  ;;  %v1244_v30 = vpop.eup %1243  ;;  %825 = vst [vmem:[%s1785_s1 + $0x20] sm:$0xff] %v809_v31 }
 0x244   : > { %v808_v34 = vmul.f32 %v1244_v30, %v1831_v45  ;;  %v1246_v35 = vpop.eup %1245 }
 0x245   : > { %1255 = vrsqrt.f32 %v782_v29  ;;  %v811_v39 = vmul.f32 %v1246_v35, %v1847_v3 }
 0x246   : > { %v764_v43 = vpop.xlane.xlu0 %763  ;;  %824 = vst [vmem:[%s1785_s1 + $0x18] sm:$0xff] %v808_v34  ;;  %1257 = vrsqrt.f32 %v785_v36 }
 0x247   : > { %v784_v37 = vmax.f32 %v764_v43, 1e-24  ;;  %v1248_v38 = vpop.eup %1247  ;;  %827 = vst [vmem:[%s1785_s1 + $0x30] sm:$0xff] %v811_v39 }
 0x248   : > { %v810_v40 = vmul.f32 %v1248_v38, %v1842_v60  ;;  %v1250_v42 = vpop.eup %1249 }
 0x249   : > { %1259 = vrsqrt.f32 %v784_v37  ;;  %v813_v49 = vmul.f32 %v1250_v42, %v1857_v15 }
 0x24a   : > { %v768_v55 = vpop.xlane.xlu0 %767  ;;  %826 = vst [vmem:[%s1785_s1 + $0x28] sm:$0xff] %v810_v40 }
 0x24b   : > { %v786_v46 = vmax.f32 %v768_v55, 1e-24  ;;  %v1252_v47 = vpop.eup %1251  ;;  %829 = vst [vmem:[%s1785_s1 + $0x40] sm:$0xff] %v813_v49 }
 0x24c   : > { %v812_v50 = vmul.f32 %v1252_v47, %v1849_v4  ;;  %v1254_v3 = vpop.eup %1253 }
 0x24d   : > { %v815_v56 = vmul.f32 %v1254_v3, %v1867_v27 }
 0x24e   : > { %v772_v60 = vpop.xlane.xlu0 %771  ;;  %828 = vst [vmem:[%s1785_s1 + $0x38] sm:$0xff] %v812_v50 }
 0x24f   : > { %v788_v51 = vmax.f32 %v772_v60, 1e-24  ;;  %v1256_v52 = vpop.eup %1255  ;;  %831 = vst [vmem:[%s1785_s1 + $0x50] sm:$0xff] %v815_v56 }
 0x250   : > { %v814_v57 = vmul.f32 %v1256_v52, %v1862_v20  ;;  %v1258_v4 = vpop.eup %1257 }
 0x251   : > { %v817_v58 = vmul.f32 %v1258_v4, %v1877_v41 }
 0x252   : > { %830 = vst [vmem:[%s1785_s1 + $0x48] sm:$0xff] %v814_v57 }
 0x253   : > { %v1260_v15 = vpop.eup %1259  ;;  %833 = vst [vmem:[%s1785_s1 + $0x60] sm:$0xff] %v817_v58 }
 0x254   : > { %v816_v59 = vmul.f32 %v1260_v15, %v1869_v28 }
 0x256   : > { %832 = vst [vmem:[%s1785_s1 + $0x58] sm:$0xff] %v816_v59 }
 0x295   : > { %v770_v45 = vpop.xlane.xlu1 %769 }
 0x296   : > { %v787_v44 = vmax.f32 %v770_v45, 1e-24 }
 0x298   : > { %1261 = vrsqrt.f32 %v787_v44 }
 0x299   : > { %1263 = vrsqrt.f32 %v786_v46 }
 0x29a   : > { %1265 = vrsqrt.f32 %v788_v51 }
 0x2a2   : > { %v1262_v61 = vpop.eup %1261 }
 0x2a3   : > { %v1264_v62 = vpop.eup %1263  ;;  %v819_v63 = vmul.f32 %v1262_v61, %v1887_v53 }
 0x2a4   : > { %v818_v27 = vmul.f32 %v1264_v62, %v1882_v48  ;;  %v1266_v20 = vpop.eup %1265 }
 0x2a5   : > { %835 = vst [vmem:[%s1785_s1 + $0x70] sm:$0xff] %v819_v63  ;;  %v820_v0 = vmul.f32 %v1266_v20, %v1889_v54 }
 0x2a6   : > { %834 = vst [vmem:[%s1785_s1 + $0x68] sm:$0xff] %v818_v27 }
 0x2a7   : > { %836 = vst [vmem:[%s1785_s1 + $0x78] sm:$0xff] %v820_v0 }
 0x2a8 PF: > { %s2063_s21 = sld [smem:[#allocation14_spill]]  ;;  %s2064_s5 = sld [smem:[#allocation21_spill]] }
 0x2a9   : > { %s851_s30 = sshll.u32 %s1785_s1, 4  ;;  %s1940_s8 = scalar_lea.sflag [#allocation5], %s301_s7  ;;  %s1936_s30 = int_to_ptr.vmem [resolvable:$true] %s851_s30 }
 0x2aa   : > { %s1327_s6 = scalar_lea.vmem %s1936_s30, 2048  ;;  %p2065_p9 = scmp.ne.s32.totalorder %s2051_s15, 0 }
 0x2ab   : > { %p1328_p10 = scmp.ne.s32.totalorder %s1936_s30, %s1327_s6  ;;  %s1488_s10 = smov [#allocation8]  }
 0x2ac   : > { %s1331_s11 = sshll.u32 %s1488_s10, 4  ;;  %s1332_s11 = int_to_ptr.vmem [resolvable:$false] %s1331_s11 }
 0x2ad   : > { %p1329_p3 = pnand %p1328_p10, %p2065_p9  ;;  %s1333_s18 = scalar_lea.vmem %s1332_s11, 4096 }
 0x2ae   : > { %s1020_s29 = sshll.u32 %s2063_s21, 11  ;;  %p1334_p11 = scmp.lt.s32.totalorder %s1936_s30, %s1332_s11 }
 0x2af   : > { %s1933_s0 = scalar_lea.hbm %s2064_s5, %s1020_s29  ;;  %p1330_p6 = pneg %p1329_p3 }
 0x2b0   : > { %p1335_p12 = scmp.lt.s32.totalorder %s1333_s18, %s1327_s6 }
 0x2b2   : > { %p1336_p0 = por %p1335_p12, %p1334_p11 }
 0x2b4   : > { %p1337_p8 = pnand %p1336_p0, %p1330_p6 }
 0x2b6   : > { %1340 = shalt.err (!%p1337_p8)
}
 0x2b7   : > { %s1341_s7 = scalar_lea.hbm %s1933_s0, 2048  ;;  %s1345_s1 = scalar_lea.hbm %s2064_s5, 4096 }
 0x2b8   : > { %p1342_p7 = scmp.ne.s32.totalorder %s1933_s0, %s1341_s7  ;;  %p1346_p4 = scmp.lt.u32.totalorder %s1933_s0, %s2064_s5 }
 0x2b9   : > { %p1347_p2 = scmp.lt.u32.totalorder %s1345_s1, %s1341_s7  ;;  %p1349_p10 = scmp.lt.u32.totalorder %s1341_s7, %s1933_s0 }
 0x2ba   : > { %p1343_p1 = pnand %p1342_p7, %p2065_p9 }
 0x2bb   : > { %p1348_p13 = por %p1347_p2, %p1346_p4 }
 0x2bc   : > { %p1344_p5 = pneg %p1343_p1 }
 0x2bd   : > { %p1350_p3 = por %p1349_p10, %p1348_p13 }
 0x2bf   : > { %p1351_p6 = pnand %p1350_p3, %p1344_p5 }
 0x2c1   : > { %1354 = shalt.err (!%p1351_p6)
}
 0x2c2   : > { %s1489_s29 = smov 128   ;;  %s1490_s25 = smov 8  }
 0x2c3   : > { %1089 = dma.vmem_to_hbm [thread:$0]  (%p2065_p9), %s1936_s30, 2048, %s1933_s0, %s1940_s8, %s1489_s29, %s1489_s29, %s1490_s25  }
 0x2c4 PF: > { %s2066_s24 = sld [smem:[#allocation12_spill]]  ;;  %p1103_p11 = scmp.ge.s32.totalorder %s1477_s28, 2 }
 0x2c5   : > { %p2067_p12 = scmp.ne.s32.totalorder %s2052_s3, 0 }
 0x2c7   : > { %p1099_p0 = pnand %p1103_p11, %p2067_p12 }
 0x2ca   : > { %s866_s6 = sand.u32 1, %s2066_s24  }
 0x2cb   : > { %s867_s10 = scalar_lea.sflag [#allocation5], %s866_s6 }
 0x2cc   : > { %1420 = dma.done.wait (!%p1099_p0), %s867_s10, 2048  }
 0x2cd   : > { %1422 = vsyncadd (!%p1099_p0), %s867_s10, 4294965248  ;;  %s23_s28 = sadd.s32 1, %s1477_s28   ;;  %s2069_s3 = sld [smem:[#allocation15_spill]] }
 0x2ce   : > { %p1969_p8 = scmp.ge.s32.totalorder %s23_s28, 6   ;;  %s2070_s0 = sld [smem:[#allocation16_spill]] }
 0x2cf   : > { %s2071_s15 = smov %s1429_s16  ;;  %s2072_s16 = smov %s1433_s17 }
 0x2d0   : > { %s2073_s17 = smov %s1617_s12  ;;  %s2074_s18 = smov %s1441_s19 }
 0x2d1   : > { %s2075_s19 = smov %s1445_s20  ;;  %s2076_s20 = smov %s1681_s9 }
 0x2d2   : > { %s2077_s21 = smov %s1453_s22  ;;  %s2078_s22 = smov %s1457_s23 }
 0x2d3   : > { %s2079_s23 = smov %s1620_s13  ;;  %s2080_s24 = smov %s1469_s26 }
 0x2d4   : > { %s2081_s25 = smov %s1473_s27  ;;  %s2082_s26 = smov %s2069_s3 }
 0x2d5   : > { %s2083_s27 = smov %s2070_s0  ;;  %22 = sbr.rel (!%p1969_p8) target bundleno = 18 (0x12), region = 108 }
 0x2dc   :  { %872 = vsyncpa [#allocation4], 1 }
 0x2dd   :  { %874 = vsyncpa [#allocation4 + $0x1], 1 }
 0x2de   :  { %875 = vsyncpa [#allocation7], 1 }
 0x2df   :  { %877 = vsyncpa [#allocation7 + $0x1], 1 }
 0x2e0   :  { %878 = vsyncpa [#allocation5], 1 }
 0x2e1   :  { %880 = vsyncpa [#allocation5 + $0x1], 1 }

</bundles_post_ra>
